<compile_context>
chip_gen: v7x
topology: tpu7x:2x2x1
jax: 0.10.0
libtpu: 0.0.40
codegen_flags: <defaults>
</compile_context>

<pallas_src>
import functools

import jax
import jax.numpy as jnp
from jax import lax
from jax.experimental import pallas as pl
from jax.experimental.pallas import tpu as pltpu

LAYER_NAME = "maxpool"
CONV_K, CONV_STRIDE, CONV_PAD = 7, 2, 3
POOL_K, POOL_STRIDE, POOL_PAD = 3, 2, 1
BN_EPS = 1e-5
COUT = 64


# ----------------------------- Pallas kernel -------------------------------

def _stem_fused_kernel(p_ref, w_ref, b_ref, o_ref, *, PH, PW):
    """conv-GEMM + bias + ReLU + 3x3/s2 maxpool, one image per grid step.

    p_ref: (1, 4*PH*PW, K) bf16 im2col patches, rows ordered
           (row-parity rh, col-parity rw, ph, pw): quadrant q = rh*2+rw holds
           conv output y[2*ph+rh, 2*pw+rw].
    w_ref: (K, COUT) bf16 BN-folded conv weights (resident).
    b_ref: (1, COUT) f32 BN-folded bias (resident).
    o_ref: (1, PH*PW, COUT) f32 pooled output, rows ordered (ph, pw).
    """
    y = jnp.dot(p_ref[0], w_ref[...], preferred_element_type=jnp.float32)
    y = jnp.maximum(y + b_ref[...], 0.0)          # (4*PH*PW, C), >= 0 after ReLU

    M = PH * PW
    C = y.shape[-1]
    q0 = y[0 * M:1 * M]        # conv y[2a,   2b  ]
    q1 = y[1 * M:2 * M]        # conv y[2a,   2b+1]
    q2 = y[2 * M:3 * M]        # conv y[2a+1, 2b  ]
    q3 = y[3 * M:4 * M]        # conv y[2a+1, 2b+1]

    # 0.0 is a valid pool-padding value: everything is >= 0 after ReLU and
    # every 3x3 window contains at least one in-bounds element.
    col0 = (lax.broadcasted_iota(jnp.int32, (M, C), 0) % PW) == 0

    def shift_b(q):            # (a, b) <- (a, b-1), pad at b == 0
        s = jnp.concatenate([jnp.zeros((1, C), q.dtype), q[:-1]], axis=0)
        return jnp.where(col0, 0.0, s)

    def shift_a(q):            # (a, b) <- (a-1, b), pad at a == 0
        return jnp.concatenate([jnp.zeros((PW, C), q.dtype), q[:-PW]], axis=0)

    # Pool window at (a, b) covers conv rows {2a-1, 2a, 2a+1}, cols {2b-1, 2b, 2b+1}.
    r0 = jnp.maximum(jnp.maximum(q0, q1), shift_b(q1))    # conv row 2a
    r1 = jnp.maximum(jnp.maximum(q2, q3), shift_b(q3))    # conv row 2a+1
    out = jnp.maximum(jnp.maximum(r0, r1), shift_a(r1))   # + conv row 2a-1

    o_ref[0] = out


def _fused_stem_pallas(patches, w_kc, bias_1c, PH, PW):
    N, M4, K = patches.shape
    C = w_kc.shape[1]
    kernel = functools.partial(_stem_fused_kernel, PH=PH, PW=PW)
    return pl.pallas_call(
        kernel,
        out_shape=jax.ShapeDtypeStruct((N, PH * PW, C), jnp.float32),
        grid=(N,),
        in_specs=[
            pl.BlockSpec((1, M4, K), lambda n: (n, 0, 0)),   # per-image patches
            pl.BlockSpec((K, C), lambda n: (0, 0)),          # resident weights
            pl.BlockSpec((1, C), lambda n: (0, 0)),          # resident bias
        ],
        out_specs=pl.BlockSpec((1, PH * PW, C), lambda n: (n, 0, 0)),
        compiler_params=pltpu.CompilerParams(
            dimension_semantics=("parallel",),
            vmem_limit_bytes=32 * 1024 * 1024,
        ),
    )(patches, w_kc, bias_1c)


# ------------------------------- JAX glue ----------------------------------

def _im2col_parity_bf16(x_nchw, k, stride, pad):
    """bf16 im2col with rows ordered (rh, rw, ph, pw); cols (Cin, kh, kw)."""
    N, Cin, H, W = x_nchw.shape
    OH = (H + 2 * pad - k) // stride + 1
    OW = (W + 2 * pad - k) // stride + 1
    assert stride == 2 and OH % 2 == 0 and OW % 2 == 0, (
        "fused stem requires even conv-output dims (H, W multiples of 4)")
    PH, PW = OH // 2, OW // 2
    xp = jnp.pad(x_nchw, ((0, 0), (0, 0), (pad, pad), (pad, pad)))
    xp = xp.astype(jnp.bfloat16)
    taps = []
    for i in range(k):
        for j in range(k):
            taps.append(xp[:, :, i:i + stride * OH:stride, j:j + stride * OW:stride])
    p = jnp.stack(taps, axis=0).reshape(k, k, N, Cin, OH, OW)
    p = p.transpose(2, 4, 5, 3, 0, 1).reshape(N, OH, OW, Cin * k * k)
    # parity-major row order: (N, OH, OW, K) -> (N, 2, 2, PH, PW, K)
    p = p.reshape(N, PH, 2, PW, 2, Cin * k * k).transpose(0, 2, 4, 1, 3, 5)
    return p.reshape(N, 4 * PH * PW, Cin * k * k), PH, PW


def _resnet_stem(x_nchw, w_kc, bias):
    N = x_nchw.shape[0]
    patches, PH, PW = _im2col_parity_bf16(x_nchw, CONV_K, CONV_STRIDE, CONV_PAD)
    z = _fused_stem_pallas(patches, w_kc, bias.reshape(1, -1), PH, PW)
    return z.reshape(N, PH, PW, COUT).transpose(0, 3, 1, 2)    # NCHW


def feature_extractor_forward(x_40, x_10, x_down_10, w_kc, bias):
    # Reproduces the view/squeeze logic of FeatureExtractor.forward.
    B, T = x_40.shape[0], x_40.shape[1]
    x_40_view = x_40.reshape(B * T, 3, x_40.shape[3], x_40.shape[4])
    x_10_sq = jnp.squeeze(x_10, axis=1)
    x_down_10_sq = jnp.squeeze(x_down_10, axis=1)
    x_10_view = x_10_sq.reshape(x_10_sq.shape[0], 3, x_10_sq.shape[2], x_10_sq.shape[3])
    x_down_10_view = x_down_10_sq.reshape(
        x_down_10_sq.shape[0], 3, x_down_10_sq.shape[2], x_down_10_sq.shape[3])
    views = (x_40_view, x_10_view, x_down_10_view)
    if len({v.shape[2:] for v in views}) == 1:
        # Batch all three streams through one fused call (amortizes weight DMA,
        # pipeline ramp, and gives the megacore more parallel grid steps).
        x_all = jnp.concatenate(views, axis=0)
        y_all = _resnet_stem(x_all, w_kc, bias)
        n0, n1 = views[0].shape[0], views[1].shape[0]
        return (y_all[:n0], y_all[n0:n0 + n1], y_all[n0 + n1:])
    return tuple(_resnet_stem(v, w_kc, bias) for v in views)


# --------------------------- params & reference ----------------------------

def init_params(key):
    k1, k2, k3, k4, k5 = jax.random.split(key, 5)
    conv_w = 0.05 * jax.random.normal(k1, (COUT, 3, CONV_K, CONV_K), jnp.float32)
    gamma = 1.0 + 0.1 * jax.random.normal(k2, (COUT,), jnp.float32)
    beta = 0.1 * jax.random.normal(k3, (COUT,), jnp.float32)
    rmean = 0.1 * jax.random.normal(k4, (COUT,), jnp.float32)
    rvar = jnp.abs(1.0 + 0.1 * jax.random.normal(k5, (COUT,), jnp.float32))
    return conv_w, gamma, beta, rmean, rvar


def fold_bn(conv_w, gamma, beta, rmean, rvar):
    scale = gamma / jnp.sqrt(rvar + BN_EPS)
    w_folded = (conv_w * scale[:, None, None, None]).astype(jnp.bfloat16)  # OIHW bf16
    bias = beta - rmean * scale                                            # f32
    w_kc = w_folded.reshape(COUT, -1).T                                    # (Cin*kh*kw, COUT) bf16
    return w_folded, w_kc, bias


def _ref_stem(x, w_oihw_bf16, bias):
    # Same BN-folded bf16 weights through XLA conv / reduce_window (f32 accum).
    y = lax.conv_general_dilated(
        x.astype(jnp.bfloat16), w_oihw_bf16,
        (CONV_STRIDE, CONV_STRIDE),
        ((CONV_PAD, CONV_PAD), (CONV_PAD, CONV_PAD)),
        dimension_numbers=("NCHW", "OIHW", "NCHW"),
        preferred_element_type=jnp.float32)
    y = jnp.maximum(y + bias[None, :, None, None], 0.0)
    return lax.reduce_window(y, -jnp.inf, lax.max, (1, 1, POOL_K, POOL_K),
                             (1, 1, POOL_STRIDE, POOL_STRIDE),
                             ((0, 0), (0, 0), (POOL_PAD, POOL_PAD),
                              (POOL_PAD, POOL_PAD)))


# --------------------------------- main -------------------------------------

if __name__ == "__main__":
    key = jax.random.PRNGKey(0)
    kx1, kx2, kx3, kp = jax.random.split(key, 4)

    B, T, H, W = 2, 2, 16, 16
    x_40 = jax.random.normal(kx1, (B, T, 3, H, W), jnp.float32)
    x_10 = jax.random.normal(kx2, (B, 1, 3, H, W), jnp.float32)
    x_down_10 = jax.random.normal(kx3, (B, 1, 3, H, W), jnp.float32)

    conv_w, gamma, beta, rmean, rvar = init_params(kp)
    w_oihw, w_kc, bias = fold_bn(conv_w, gamma, beta, rmean, rvar)

    fwd = jax.jit(feature_extractor_forward)
    out_40, out_10, out_down_10 = fwd(x_40, x_10, x_down_10, w_kc, bias)
    jax.block_until_ready((out_40, out_10, out_down_10))

    # Sanity check against a pure-XLA reference of the same (bf16-folded) stem.
    ref_40 = _ref_stem(x_40.reshape(B * T, 3, H, W), w_oihw, bias)
    ref_10 = _ref_stem(x_10.reshape(B, 3, H, W), w_oihw, bias)
    ref_d10 = _ref_stem(x_down_10.reshape(B, 3, H, W), w_oihw, bias)
    assert out_40.shape == ref_40.shape and out_10.shape == ref_10.shape
    assert out_down_10.shape == ref_d10.shape
    assert jnp.allclose(out_40, ref_40, rtol=1e-3, atol=1e-3)
    assert jnp.allclose(out_10, ref_10, rtol=1e-3, atol=1e-3)
    assert jnp.allclose(out_down_10, ref_d10, rtol=1e-3, atol=1e-3)

    print("KERNEL_OK")
</pallas_src>

<mosaic_0001>
module attributes {stable_mosaic.version = 11 : i64} {
  func.func @_stem_fused_kernel(%arg0: i32, %arg1: memref<1x64x147xbf16, #tpu.memory_space<vmem>>, %arg2: memref<147x64xbf16, #tpu.memory_space<vmem>>, %arg3: memref<1x64xf32, #tpu.memory_space<vmem>>, %arg4: memref<1x16x64xf32, #tpu.memory_space<vmem>>) attributes {dimension_semantics = [#tpu.dimension_semantics<parallel>], iteration_bounds = array<i64: 8>, scalar_prefetch = 0 : i64, scratch_operands = 0 : i64, tpu.core_type = #tpu.core_type<tc>, window_params = [{transform_indices = @transform_0, window_bounds = array<i64: 1, 64, 147>}, {pipeline_mode = #tpu.pipeline_mode<synchronous>, transform_indices = @transform_1, window_bounds = array<i64: 147, 64>}, {pipeline_mode = #tpu.pipeline_mode<synchronous>, transform_indices = @transform_2, window_bounds = array<i64: 1, 64>}, {transform_indices = @transform_3, window_bounds = array<i64: 1, 16, 64>}]} {
    %c0 = arith.constant 0 : index
    %c0_0 = arith.constant 0 : index
    %c0_1 = arith.constant 0 : index
    %0 = vector.load %arg1[%c0, %c0_0, %c0_1] : memref<1x64x147xbf16, #tpu.memory_space<vmem>>, vector<1x64x147xbf16>
    %1 = vector.shape_cast %0 : vector<1x64x147xbf16> to vector<64x147xbf16>
    %c0_2 = arith.constant 0 : index
    %c0_3 = arith.constant 0 : index
    %2 = vector.load %arg2[%c0_2, %c0_3] : memref<147x64xbf16, #tpu.memory_space<vmem>>, vector<147x64xbf16>
    %cst = arith.constant dense<0.000000e+00> : vector<64x64xf32>
    %3 = tpu.matmul %1, %2, %cst {dimension_numbers = #tpu.dot_dimension_numbers<[1], [0], [0], [1], [0, 0, 1, 1], [], []>} : vector<64x147xbf16>, vector<147x64xbf16>, vector<64x64xf32> -> vector<64x64xf32>
    %c0_4 = arith.constant 0 : index
    %c0_5 = arith.constant 0 : index
    %4 = vector.load %arg3[%c0_4, %c0_5] : memref<1x64xf32, #tpu.memory_space<vmem>>, vector<1x64xf32>
    %5 = vector.broadcast %4 : vector<1x64xf32> to vector<64x64xf32>
    %6 = arith.addf %3, %5 : vector<64x64xf32>
    %cst_6 = arith.constant 0.000000e+00 : f32
    %7 = vector.broadcast %cst_6 : f32 to vector<64x64xf32>
    %8 = arith.maximumf %6, %7 : vector<64x64xf32>
    %9 = vector.extract_strided_slice %8 {offsets = [0, 0], sizes = [16, 64], strides = [1, 1]} : vector<64x64xf32> to vector<16x64xf32>
    %10 = vector.extract_strided_slice %8 {offsets = [16, 0], sizes = [16, 64], strides = [1, 1]} : vector<64x64xf32> to vector<16x64xf32>
    %11 = vector.extract_strided_slice %8 {offsets = [32, 0], sizes = [16, 64], strides = [1, 1]} : vector<64x64xf32> to vector<16x64xf32>
    %12 = vector.extract_strided_slice %8 {offsets = [48, 0], sizes = [16, 64], strides = [1, 1]} : vector<64x64xf32> to vector<16x64xf32>
    %13 = tpu.iota {dimensions = array<i32: 0>} : vector<16x64xi32>
    %c4_i32 = arith.constant 4 : i32
    %c0_i32 = arith.constant 0 : i32
    %14 = arith.cmpi eq, %c4_i32, %c0_i32 : i32
    %c1_i32 = arith.constant 1 : i32
    %15 = arith.select %14, %c1_i32, %c4_i32 : i32
    %16 = vector.broadcast %15 : i32 to vector<16x64xi32>
    %17 = arith.remsi %13, %16 : vector<16x64xi32>
    %c0_i32_7 = arith.constant 0 : i32
    %18 = vector.broadcast %c0_i32_7 : i32 to vector<16x64xi32>
    %19 = arith.cmpi ne, %17, %18 : vector<16x64xi32>
    %c0_i32_8 = arith.constant 0 : i32
    %20 = vector.broadcast %c0_i32_8 : i32 to vector<16x64xi32>
    %21 = arith.cmpi slt, %17, %20 : vector<16x64xi32>
    %c0_i32_9 = arith.constant 0 : i32
    %22 = arith.cmpi slt, %15, %c0_i32_9 : i32
    %23 = vector.broadcast %22 : i1 to vector<16x64xi1>
    %24 = vector.broadcast %23 : vector<16x64xi1> to vector<16x64xi1>
    %25 = arith.xori %21, %24 : vector<16x64xi1>
    %26 = arith.andi %25, %19 : vector<16x64xi1>
    %27 = vector.broadcast %15 : i32 to vector<16x64xi32>
    %28 = arith.addi %17, %27 : vector<16x64xi32>
    %29 = arith.select %26, %28, %17 : vector<16x64xi1>, vector<16x64xi32>
    %c0_i32_10 = arith.constant 0 : i32
    %30 = vector.broadcast %c0_i32_10 : i32 to vector<16x64xi32>
    %31 = arith.cmpi eq, %29, %30 : vector<16x64xi32>
    %32 = arith.maximumf %9, %10 : vector<16x64xf32>
    %cst_11 = arith.constant 0.000000e+00 : f32
    %33 = vector.broadcast %cst_11 : f32 to vector<1x64xf32>
    %34 = vector.extract_strided_slice %10 {offsets = [0, 0], sizes = [15, 64], strides = [1, 1]} : vector<16x64xf32> to vector<15x64xf32>
    %35 = tpu.concatenate %33, %34 in 0 : vector<1x64xf32>, vector<15x64xf32> -> vector<16x64xf32>
    %cst_12 = arith.constant 0.000000e+00 : f32
    %36 = vector.broadcast %cst_12 : f32 to vector<16x64xf32>
    %37 = arith.select %31, %36, %35 : vector<16x64xi1>, vector<16x64xf32>
    %38 = arith.maximumf %32, %37 : vector<16x64xf32>
    %39 = arith.maximumf %11, %12 : vector<16x64xf32>
    %cst_13 = arith.constant 0.000000e+00 : f32
    %40 = vector.broadcast %cst_13 : f32 to vector<1x64xf32>
    %41 = vector.extract_strided_slice %12 {offsets = [0, 0], sizes = [15, 64], strides = [1, 1]} : vector<16x64xf32> to vector<15x64xf32>
    %42 = tpu.concatenate %40, %41 in 0 : vector<1x64xf32>, vector<15x64xf32> -> vector<16x64xf32>
    %cst_14 = arith.constant 0.000000e+00 : f32
    %43 = vector.broadcast %cst_14 : f32 to vector<16x64xf32>
    %44 = arith.select %31, %43, %42 : vector<16x64xi1>, vector<16x64xf32>
    %45 = arith.maximumf %39, %44 : vector<16x64xf32>
    %46 = arith.maximumf %38, %45 : vector<16x64xf32>
    %cst_15 = arith.constant 0.000000e+00 : f32
    %47 = vector.broadcast %cst_15 : f32 to vector<4x64xf32>
    %48 = vector.extract_strided_slice %45 {offsets = [0, 0], sizes = [12, 64], strides = [1, 1]} : vector<16x64xf32> to vector<12x64xf32>
    %49 = tpu.concatenate %47, %48 in 0 : vector<4x64xf32>, vector<12x64xf32> -> vector<16x64xf32>
    %50 = arith.maximumf %46, %49 : vector<16x64xf32>
    %c0_16 = arith.constant 0 : index
    %c0_17 = arith.constant 0 : index
    %c0_18 = arith.constant 0 : index
    %51 = vector.load %arg4[%c0_16, %c0_17, %c0_18] : memref<1x16x64xf32, #tpu.memory_space<vmem>>, vector<1x16x64xf32>
    %52 = vector.shape_cast %51 : vector<1x16x64xf32> to vector<16x64xf32>
    %53 = vector.shape_cast %50 : vector<16x64xf32> to vector<1x16x64xf32>
    tpu.vector_store %arg4[%c0_16, %c0_17, %c0_18], %53 {strides = array<i32>} : memref<1x16x64xf32, #tpu.memory_space<vmem>>, vector<1x16x64xf32>,
    return
  }
  func.func @transform_0(%arg0: i32) -> (i32, i32, i32) {
    %c0_i32 = arith.constant 0 : i32
    %c0_i32_0 = arith.constant 0 : i32
    %c0_i32_1 = arith.constant 0 : i32
    return %arg0, %c0_i32, %c0_i32_0 : i32, i32, i32
  }
  func.func @transform_1(%arg0: i32) -> (i32, i32) {
    %c0_i32 = arith.constant 0 : i32
    %c0_i32_0 = arith.constant 0 : i32
    %c0_i32_1 = arith.constant 0 : i32
    return %c0_i32, %c0_i32_0 : i32, i32
  }
  func.func @transform_2(%arg0: i32) -> (i32, i32) {
    %c0_i32 = arith.constant 0 : i32
    %c0_i32_0 = arith.constant 0 : i32
    %c0_i32_1 = arith.constant 0 : i32
    return %c0_i32, %c0_i32_0 : i32, i32
  }
  func.func @transform_3(%arg0: i32) -> (i32, i32, i32) {
    %c0_i32 = arith.constant 0 : i32
    %c0_i32_0 = arith.constant 0 : i32
    %c0_i32_1 = arith.constant 0 : i32
    return %arg0, %c0_i32, %c0_i32_0 : i32, i32, i32
  }
}

</mosaic_0001>

<bundles_post_ra>
// kernel: feature_extractor_forward.1
= control target key start
LH: loop header
LB: loop body
LE: loop exit
PB: predicated region body
PF: predicated region fallthrough
CT: control target
= control target key end

     0   :  { %s638_s12 = smov 0   ;;  %s729_s0 = inlined_call_operand.vmem [shape: bf16[8,64,147], index: 0, kind: input, shape index: {}]   ;;  %s730_s1 = inlined_call_operand.vmem [shape: bf16[147,64], index: 1, kind: input, shape index: {}]   ;;  %s731_s2 = inlined_call_operand.vmem [shape: f32[1,64], index: 2, kind: input, shape index: {}]   ;;  %s732_s3 = inlined_call_operand.vmem [shape: f32[8,16,64], index: 3, kind: output, shape index: {}]  }
   0x1 LB: > { %s520_s13 = sadd.s32 4294967295, %s614_s12   ;;  %p524_p0 = scmp.ge.s32.totalorder %s614_s12, 1  ;;  %s614_s12 = sphi %s638_s12, %s13_s12  }
   0x2   : > { %p137_p1 = scmp.lt.s32.totalorder %s614_s12, 9 }
   0x4   : > { %p138_p2 = pnand %p524_p0, %p137_p1 }
   0x5   : > { %v586_v0 = vld [vmem:[%s730_s1] sm:$0xff] (!%p138_p2)   ;;  %v616_v1 = vmov (!%p138_p2), 0   ;;  %v587_v2 = vld [vmem:[%s730_s1 + $0x8] sm:$0xff] (!%p138_p2)   ;;  %v588_v3 = vld [vmem:[%s730_s1 + $0x10] sm:$0xff] (!%p138_p2)   ;;  %p161_p3 = scmp.lt.s32.totalorder (!%p138_p2), %s520_s13, 7  ;;  %vm299_vm0 = vcmask (!%p138_p2), 154624   ;;  %v392_v23 = vlaneseq (!%p138_p2) }
   0x6   : > { %141 = sbr.rel (%p138_p2) target bundleno = 286 (0x11e), region = 32  ;;  %319 = vmatprep.subr.bf16.mxu0 (!%p138_p2), %v616_v1  ;;  %556 = vmatprep.subr.bf16.mxu1 (!%p138_p2), %v616_v1  ;;  %v589_v4 = vld [vmem:[%s730_s1 + $0x18] sm:$0xff] (!%p138_p2)   ;;  %v590_v6 = vld [vmem:[%s730_s1 + $0x20] sm:$0xff] (!%p138_p2)   ;;  %v591_v8 = vld [vmem:[%s730_s1 + $0x28] sm:$0xff] (!%p138_p2)   ;;  %vm312_vm1 = vcmask (!%p138_p2), 1040384   ;;  %vm313_vm2 = vcmask (!%p138_p2), 1041408  }
   0x7   : > { %320 = vmatpush1.bf16.msra.mxu0 (!%p138_p2), %v586_v0  ;;  %566 = vmatpush1.bf16.msra.mxu1 (!%p138_p2), %v586_v0  ;;  %v592_v9 = vld [vmem:[%s730_s1 + $0x30] sm:$0xff] (!%p138_p2)   ;;  %v593_v10 = vld [vmem:[%s730_s1 + $0x38] sm:$0xff] (!%p138_p2)   ;;  %v617_v11 = vmov (!%p138_p2), 65535   ;;  %v594_v13 = vld [vmem:[%s730_s1 + $0x40] sm:$0xff] (!%p138_p2)   ;;  %v393_v28 = vshrl.u32 (!%p138_p2), %v392_v23, 7  ;;  %vm453_vm5 = vcmask (!%p138_p2), 1043456  }
   0x8   : > { %321 = vmatprep.subr.bf16.mxu0 (!%p138_p2), %v616_v1  ;;  %557 = vmatprep.subr.bf16.mxu1 (!%p138_p2), %v616_v1  ;;  %v314_v12 = vsel (!%p138_p2), %vm312_vm1, 4294967295, %v617_v11  ;;  %v595_v14 = vld [vmem:[%s730_s1 + $0x48] ss:$0 sps:$4 sm:$0x33] (!%p138_p2)   ;;  %v529_v31 = vld [vmem:[%s731_s2] ss:$0 sm:$0xff] (!%p138_p2) }
   0x9   : > { %v315_v15 = vsel (!%p138_p2), %vm313_vm2, %v314_v12, 0  ;;  %v394_v34 = vadd.s32 (!%p138_p2), 8, %v393_v28  ;;  %v399_v38 = vand.u32 (!%p138_p2), 3, %v393_v28  ;;  %vm462_vm6 = vcmask (!%p138_p2), 523264  }
   0xa   : > { %v317_v16 = vand.u32 (!%p138_p2), %v595_v14, %v315_v15 }
   0xb   : > { %322 = vmatpush1.bf16.msra.mxu0 (!%p138_p2), %v587_v2  ;;  %567 = vmatpush1.bf16.msra.mxu1 (!%p138_p2), %v587_v2  ;;  %v406_v44 = vand.u32 (!%p138_p2), 3, %v394_v34  ;;  %vm700_vm3 = vcmp.eq.s32.totalorder (!%p138_p2), %v399_v38, 0 }
   0xc   : > { %323 = vmatprep.subr.bf16.mxu0 (!%p138_p2), %v616_v1  ;;  %558 = vmatprep.subr.bf16.mxu1 (!%p138_p2), %v616_v1 }
   0xd   : > { %s738_s13 = smov (!%p161_p3, %s520_s13), 7  ;;  %vm706_vm4 = vcmp.eq.s32.totalorder %v406_v44, 0 }
   0xe   : > { %s554_s22 = sshll.u32 %s738_s13, 6  ;;  %s555_s15 = sshll.u32 %s738_s13, 4 }
   0xf   : > { %324 = vmatpush1.bf16.msra.mxu0 %v588_v3  ;;  %568 = vmatpush1.bf16.msra.mxu1 %v588_v3  ;;  %s664_s25 = scalar_lea.vmem %s729_s0, %s554_s22  ;;  %s170_s18 = scalar_lea.vmem %s732_s3, %s555_s15 }
  0x10   : > { %325 = vmatprep.subr.bf16.mxu0 %v616_v1  ;;  %559 = vmatprep.subr.bf16.mxu1 %v616_v1  ;;  %v598_v5 = vld [vmem:[%s664_s25 + $0x4] ss:$8 sps:$4 sm:$0xff]   ;;  %v596_v17 = vld [vmem:[%s664_s25] ss:$8 sps:$4 sm:$0xff]   ;;  %v602_v19 = vld [vmem:[%s664_s25 + $0x14] ss:$8 sps:$4 sm:$0xff]  }
  0x11   : > { %v601_v7 = vld [vmem:[%s664_s25 + $0x24] ss:$8 sps:$4 sm:$0xff]   ;;  %548 = vmatprep.mubr.msk.bf16.mxu0 %vm299_vm0, %v598_v5  ;;  %v599_v18 = vld [vmem:[%s664_s25 + $0x20] ss:$8 sps:$4 sm:$0xff]   ;;  %v604_v20 = vld [vmem:[%s664_s25 + $0x34] ss:$8 sps:$4 sm:$0xff]  }
  0x12   : > { %550 = vmatprep.mubr.msk.bf16.mxu1 %vm299_vm0, %v601_v7  ;;  %v606_v21 = vld [vmem:[%s664_s25 + $0x10] ss:$8 sps:$4 sm:$0xff]  }
  0x13   : > { %326 = vmatpush1.bf16.msra.mxu0 %v589_v4  ;;  %569 = vmatpush1.bf16.msra.mxu1 %v589_v4  ;;  %v607_v22 = vld [vmem:[%s664_s25 + $0x30] ss:$8 sps:$4 sm:$0xff]  }
  0x14   : > { %327 = vmatprep.subr.bf16.mxu0 %v616_v1  ;;  %560 = vmatprep.subr.bf16.mxu1 %v616_v1 }
  0x17   : > { %328 = vmatpush1.bf16.msra.mxu0 %v590_v6  ;;  %570 = vmatpush1.bf16.msra.mxu1 %v590_v6 }
  0x18   : > { %329 = vmatprep.subr.bf16.mxu0 %v616_v1  ;;  %561 = vmatprep.subr.bf16.mxu1 %v616_v1 }
  0x1b   : > { %330 = vmatpush1.bf16.msra.mxu0 %v591_v8  ;;  %571 = vmatpush1.bf16.msra.mxu1 %v591_v8 }
  0x1c   : > { %331 = vmatprep.subr.bf16.mxu0 %v616_v1  ;;  %562 = vmatprep.subr.bf16.mxu1 %v616_v1 }
  0x1f   : > { %332 = vmatpush1.bf16.msra.mxu0 %v592_v9  ;;  %572 = vmatpush1.bf16.msra.mxu1 %v592_v9 }
  0x20   : > { %333 = vmatprep.subr.bf16.mxu0 %v616_v1  ;;  %563 = vmatprep.subr.bf16.mxu1 %v616_v1 }
  0x23   : > { %334 = vmatpush1.bf16.msra.mxu0 %v593_v10  ;;  %573 = vmatpush1.bf16.msra.mxu1 %v593_v10 }
  0x24   : > { %335 = vmatprep.subr.bf16.mxu0 %v616_v1  ;;  %564 = vmatprep.subr.bf16.mxu1 %v616_v1 }
  0x27   : > { %336 = vmatpush1.bf16.msra.mxu0 %v594_v13  ;;  %574 = vmatpush1.bf16.msra.mxu1 %v594_v13 }
  0x28   : > { %337 = vmatprep.subr.bf16.mxu0 %v616_v1  ;;  %565 = vmatprep.subr.bf16.mxu1 %v616_v1 }
  0x2b   : > { %338 = vmatpush1.bf16.msra.mxu0 %v317_v16  ;;  %575 = vmatpush1.bf16.msra.mxu1 %v317_v16 }
  0x2e   : > { %352 = vmatmul.mubr.bf16.vlgmr.msra.gmra.mrb[0].mxu0 %v596_v17  ;;  %368 = vmatmul.mubr.bf16.vlgmr.msra.gmra.mrb[0].mxu1 %v599_v18 }
  0x2f   : > { %549 = vmatprep.mubr.msk.bf16.mxu0 %vm299_vm0, %v602_v19  ;;  %551 = vmatprep.mubr.msk.bf16.mxu1 %vm299_vm0, %v604_v20 }
  0x36   : > { %360 = vmatmul.mubr.bf16.gmra.mrb[4].mxu0 %v606_v21  ;;  %376 = vmatmul.mubr.bf16.gmra.mrb[4].mxu1 %v607_v22 }
 0x101   : > { %v353_v24 = vpop.f32.mrb[0].mxu0  ;;  %v369_v25 = vpop.f32.mrb[0].mxu1 }
 0x102   : > { %v355_v26 = vpop.f32.mrb[1].mxu0  ;;  %v371_v27 = vpop.f32.mrb[1].mxu1  ;;  %v354_v35 = vadd.f32 %v529_v31, %v353_v24  ;;  %v370_v36 = vadd.f32 %v529_v31, %v369_v25 }
 0x103   : > { %v356_v29 = vpop.f32.mrb[2].mxu0  ;;  %v372_v30 = vpop.f32.mrb[2].mxu1 }
 0x104   : > { %v358_v32 = vpop.f32.mrb[3].mxu0  ;;  %v374_v33 = vpop.f32.mrb[3].mxu1  ;;  %v384_v45 = vmax.f32 %v354_v35, 0.0  ;;  %v388_v46 = vmax.f32 %v370_v36, 0.0  ;;  %v357_v47 = vadd.f32 %v529_v31, %v356_v29  ;;  %v373_v48 = vadd.f32 %v529_v31, %v372_v30 }
 0x106   : > { %v385_v62 = vmax.f32 %v357_v47, 0.0  ;;  %v389_v1 = vmax.f32 %v373_v48, 0.0 }
 0x109   : > { %v361_v37 = vpop.f32.mrb[4].mxu0  ;;  %v377_v39 = vpop.f32.mrb[4].mxu1 }
 0x10a   : > { %v362_v40 = vadd.f32 %v529_v31, %v361_v37  ;;  %v378_v41 = vadd.f32 %v529_v31, %v377_v39  ;;  %v363_v42 = vpop.f32.mrb[5].mxu0  ;;  %v379_v43 = vpop.f32.mrb[5].mxu1 }
 0x10b   : > { %v364_v49 = vpop.f32.mrb[6].mxu0  ;;  %v380_v50 = vpop.f32.mrb[6].mxu1 }
 0x10c   : > { %v386_v51 = vmax.f32 %v362_v40, 0.0  ;;  %v390_v52 = vmax.f32 %v378_v41, 0.0  ;;  %v365_v53 = vadd.f32 %v529_v31, %v364_v49  ;;  %v381_v54 = vadd.f32 %v529_v31, %v380_v50  ;;  %v366_v55 = vpop.f32.mrb[7].mxu0  ;;  %v382_v56 = vpop.f32.mrb[7].mxu1 }
 0x10e   : > { %v421_v58 = vmax.f32 %v384_v45, %v386_v51  ;;  %v425_v59 = vrot.slane %v386_v51, 7  ;;  %v435_v60 = vmax.f32 %v388_v46, %v390_v52  ;;  %v439_v61 = vrot.slane %v390_v52, 7 }
 0x10f   : > { %v387_v63 = vmax.f32 %v365_v53, 0.0  ;;  %v391_v0 = vmax.f32 %v381_v54, 0.0 }
 0x110   : > { %v430_v2 = vsel %vm312_vm1, 0.0, %v425_v59  ;;  %v444_v3 = vsel %vm312_vm1, 0.0, %v439_v61 }
 0x111   : > { %v431_v5 = vsel %vm700_vm3, 0.0, %v430_v2  ;;  %v445_v6 = vsel %vm700_vm3, 0.0, %v444_v3  ;;  %v422_v7 = vmax.f32 %v385_v62, %v387_v63  ;;  %v426_v8 = vrot.slane %v387_v63, 7 }
 0x112   : > { %v433_v9 = vmax.f32 %v421_v58, %v431_v5  ;;  %v447_v10 = vmax.f32 %v435_v60, %v445_v6  ;;  %v436_v11 = vmax.f32 %v389_v1, %v391_v0  ;;  %v440_v12 = vrot.slane %v391_v0, 7 }
 0x113   : > { %v427_v13 = vsel %vm312_vm1, %v425_v59, %v426_v8 }
 0x114   : > { %v449_v14 = vmax.f32 %v433_v9, %v447_v10  ;;  %v454_v15 = vrot.slane %v447_v10, 4  ;;  %v432_v16 = vsel %vm706_vm4, 0.0, %v427_v13  ;;  %v441_v17 = vsel %vm312_vm1, %v439_v61, %v440_v12 }
 0x115   : > { %v434_v18 = vmax.f32 %v422_v7, %v432_v16  ;;  %v446_v19 = vsel %vm706_vm4, 0.0, %v441_v17 }
 0x116   : > { %v459_v20 = vsel %vm453_vm5, 0.0, %v454_v15  ;;  %v448_v21 = vmax.f32 %v436_v11, %v446_v19 }
 0x117   : > { %v460_v22 = vmax.f32 %v449_v14, %v459_v20 }
 0x118   : > { %v450_v23 = vmax.f32 %v434_v18, %v448_v21  ;;  %v455_v24 = vrot.slane %v448_v21, 4 }
 0x119   : > { %463 = vst.msk [vmem:[%s170_s18] sm:$0xff] %vm462_vm6, %v460_v22 }
 0x11a   : > { %v456_v25 = vsel %vm453_vm5, %v454_v15, %v455_v24 }
 0x11b   : > { %v461_v26 = vmax.f32 %v450_v23, %v456_v25 }
 0x11d   : > { %464 = vst.msk [vmem:[%s170_s18 + $0x8] sm:$0xff] %vm462_vm6, %v461_v26 }
 0x11e PF: > { %s13_s12 = sadd.s32 1, %s614_s12  }
 0x11f   : > { %p10_p4 = scmp.ge.s32.totalorder %s13_s12, 10  }
 0x121   :  { %12 = sbr.rel (!%p10_p4) target bundleno = 1 (0x1), region = 62 }

</bundles_post_ra>
